<compile_context>
chip_gen: v7x
topology: tpu7x:2x2x1
jax: 0.10.0
libtpu: 0.0.40
codegen_flags: <defaults>
</compile_context>

<pallas_src>
import functools
import math

import jax
import jax.numpy as jnp
from jax.experimental import pallas as pl
from jax.experimental.pallas import tpu as pltpu

_LN_EPS = 1e-5
_TARGET_ROWS = 2048   # hidden-activation rows per grid step (VMEM-safe everywhere)


# ----------------------------- Pallas kernel -------------------------------- #

def _mcscore_kernel(x_ref, w1_ref, b1_ref, wr1_ref, br1_ref, wr2_ref, br2_ref,
                    wo_ref, bo_ref, o_ref, *, order):
    """One batch tile: raw (tile_b, L, F) trajectory in, folded (tile_b, L, F)
    score out.  All matmuls hit the MXU with f32 accumulation; all vector math
    is f32 (v5e-safe)."""
    k = order
    tb, seq_l, feat = x_ref.shape
    lp = seq_l - 2 * k

    x = x_ref[...].astype(jnp.float32)                       # (tb, L, F)

    # --- first Linear == (2k+1)-tap temporal conv over raw x (unfold fused) ---
    h = None
    for j in range(2 * k + 1):
        xj = x[:, j:j + lp, :].reshape(tb * lp, feat)         # window slice, in VMEM
        pj = jnp.dot(xj, w1_ref[j], preferred_element_type=jnp.float32)
        h = pj if h is None else h + pj
    h = h + b1_ref[...]                                       # TimeEmbedding folded in

    # --- parameterless LayerNorm (two-pass unbiased var == torch.var_mean) ---
    hd = h.shape[-1]
    mean = jnp.mean(h, axis=-1, keepdims=True)
    diff = h - mean
    var = jnp.sum(diff * diff, axis=-1, keepdims=True) * (1.0 / (hd - 1))
    hn = diff * jax.lax.rsqrt(var + _LN_EPS)                  # rsqrt -> EUP slot

    # --- residual block: h + Linear(ReLU(Linear(LayerNorm(h)))) ---
    z = jnp.dot(hn, wr1_ref[...], preferred_element_type=jnp.float32) + br1_ref[...]
    z = jnp.maximum(z, 0.0)
    z = jnp.dot(z, wr2_ref[...], preferred_element_type=jnp.float32) + br2_ref[...]
    h = h + z

    # --- output projection (real width (2k+1)*F only, no lane padding) ---
    s = jnp.dot(h, wo_ref[...], preferred_element_type=jnp.float32) + bo_ref[...]
    s3 = s.reshape(tb, lp, (2 * k + 1) * feat)

    # --- fold fused in-kernel: HBM writeback is exactly (tb, L, F) ---
    o_ref[:, k:k + lp, :] = s3[:, :, k * feat:(k + 1) * feat].astype(o_ref.dtype)
    if k > 0:
        o_ref[:, :k, :] = (
            s3[:, 0, :k * feat].reshape(tb, k, feat).astype(o_ref.dtype))
        o_ref[:, k + lp:, :] = (
            s3[:, lp - 1, (k + 1) * feat:].reshape(tb, k, feat).astype(o_ref.dtype))


# ------------------------------ glue (plain JAX) ----------------------------- #

def time_embedding(t, params):
    """TimeEmbedding: scalar t -> (E,).  Tiny; kept in plain JAX."""
    e = params["te_w2"].shape[-1]
    freqs = jnp.pi * jnp.arange(1, e + 1, dtype=jnp.float32)
    te = freqs * t[..., None]                                   # (E,)
    te = jnp.concatenate([jnp.cos(te), jnp.sin(te)], axis=-1)   # (2E,)
    te = te @ params["te_w1"] + params["te_b1"]
    te = jax.nn.silu(te)
    te = te @ params["te_w2"] + params["te_b2"]
    return te


def mcscore_forward(x, t, params, order, *, tile_b=None, io_dtype=None):
    """MCScoreNet.forward: unfold -> ScoreNet -> fold, all fused in one kernel.

    x: (B, L, F) float32;  t: scalar float32.  Returns (B, L, F).
    io_dtype=jnp.bfloat16 halves streamed HBM bytes (recommended on v6e/v7x);
    kernel-internal math stays f32 regardless.
    """
    b, seq_l, feat = x.shape
    k = order
    lp = seq_l - 2 * k

    # time embedding folded into the first-layer bias (t is a scalar)
    te = time_embedding(t, params)                                     # (E,)
    b1_eff = (te @ params["w1_te"] + params["b1"]).astype(jnp.float32)  # (1, hidden)

    x_in = x if io_dtype is None else x.astype(io_dtype)

    # batch tiling: ~_TARGET_ROWS hidden rows per step; no forced splitting.
    if tile_b is None:
        tile_b = max(1, min(b, _TARGET_ROWS // max(lp, 1)))
    nb = pl.cdiv(b, tile_b)
    b_pad = nb * tile_b
    if b_pad != b:
        x_in = jnp.pad(x_in, ((0, b_pad - b), (0, 0), (0, 0)))

    weights = [params["w1"], b1_eff,
               params["wr1"], params["br1"],
               params["wr2"], params["br2"],
               params["wo"], params["bo"]]

    def const_spec(a):
        # Constant index_map -> tiny weights stay VMEM-resident across all
        # grid steps; only the batch-tile stream is pipelined.
        nd = a.ndim
        return pl.BlockSpec(a.shape, lambda i, _nd=nd: (0,) * _nd)

    kernel = functools.partial(_mcscore_kernel, order=k)
    out = pl.pallas_call(
        kernel,
        out_shape=jax.ShapeDtypeStruct((b_pad, seq_l, feat), x_in.dtype),
        grid=(nb,),
        in_specs=[pl.BlockSpec((tile_b, seq_l, feat), lambda i: (i, 0, 0))]
                 + [const_spec(w) for w in weights],
        out_specs=pl.BlockSpec((tile_b, seq_l, feat), lambda i: (i, 0, 0)),
        compiler_params=pltpu.CompilerParams(dimension_semantics=("parallel",)),
    )(x_in, *weights)

    return out[:b].astype(x.dtype)


# ------------------------------ parameters ----------------------------------- #

def init_params(key, features, order, embedding=16, hidden=64):
    """Synthetic init matching PyTorch nn.Linear default: U(+-1/sqrt(fan_in)).

    The first Linear(d_xu + E, hidden) is split into its xu rows (stored as a
    (2k+1, F, hidden) conv stencil) and its time-embedding rows (folded into
    the bias per call).  No lane padding anywhere.
    """
    f_out = features * (2 * order + 1)           # real in/out channels of ScoreNet
    d_xu = f_out

    def linear(k, fan_in, fan_out):
        kw, kb = jax.random.split(k)
        bound = 1.0 / math.sqrt(fan_in)
        w = jax.random.uniform(kw, (fan_in, fan_out), jnp.float32, -bound, bound)
        b = jax.random.uniform(kb, (1, fan_out), jnp.float32, -bound, bound)
        return w, b

    keys = jax.random.split(key, 6)
    p = {}
    w, b_ = linear(keys[0], 2 * embedding, 256)
    p["te_w1"], p["te_b1"] = w, b_[0]
    w, b_ = linear(keys[1], 256, embedding)
    p["te_w2"], p["te_b2"] = w, b_[0]

    # Linear(d_xu + embedding, hidden): split rows; xu part as conv stencil.
    w1, b1 = linear(keys[2], d_xu + embedding, hidden)
    p["w1"] = w1[:d_xu].reshape(2 * order + 1, features, hidden)   # (2k+1, F, H)
    p["w1_te"] = w1[d_xu:]                                          # (E, H)
    p["b1"] = b1                                                    # (1, H)

    p["wr1"], p["br1"] = linear(keys[3], hidden, hidden)   # residual block linear 1
    p["wr2"], p["br2"] = linear(keys[4], hidden, hidden)   # residual block linear 2
    p["wo"], p["bo"] = linear(keys[5], hidden, f_out)      # Linear(hidden, (2k+1)*F)
    return p


# --------------------------------- main --------------------------------------- #

if __name__ == "__main__":
    key = jax.random.PRNGKey(0)
    kx, kp = jax.random.split(key)

    B, L, FEATURES, ORDER = 2, 8, 4, 1                 # x: (2, 8, 4), order-1 Markov chain
    x = jax.random.normal(kx, (B, L, FEATURES), jnp.float32)
    t = jnp.array(0.5, dtype=jnp.float32)              # scalar diffusion time
    params = init_params(kp, FEATURES, ORDER)

    fwd = jax.jit(lambda x, t: mcscore_forward(x, t, params, ORDER))
    out = fwd(x, t)
    jax.block_until_ready(out)

    assert out.shape == (B, L, FEATURES), out.shape
    assert jnp.all(jnp.isfinite(out))
    print("KERNEL_OK")
</pallas_src>

<mosaic_0001>
module attributes {stable_mosaic.version = 11 : i64} {
  func.func @_mcscore_kernel(%arg0: i32, %arg1: memref<2x8x4xf32, #tpu.memory_space<vmem>>, %arg2: memref<3x4x64xf32, #tpu.memory_space<vmem>>, %arg3: memref<1x64xf32, #tpu.memory_space<vmem>>, %arg4: memref<64x64xf32, #tpu.memory_space<vmem>>, %arg5: memref<1x64xf32, #tpu.memory_space<vmem>>, %arg6: memref<64x64xf32, #tpu.memory_space<vmem>>, %arg7: memref<1x64xf32, #tpu.memory_space<vmem>>, %arg8: memref<64x12xf32, #tpu.memory_space<vmem>>, %arg9: memref<1x12xf32, #tpu.memory_space<vmem>>, %arg10: memref<2x8x4xf32, #tpu.memory_space<vmem>>) attributes {dimension_semantics = [#tpu.dimension_semantics<parallel>], iteration_bounds = array<i64: 1>, scalar_prefetch = 0 : i64, scratch_operands = 0 : i64, tpu.core_type = #tpu.core_type<tc>, window_params = [{transform_indices = @transform_0, window_bounds = array<i64: 2, 8, 4>}, {pipeline_mode = #tpu.pipeline_mode<synchronous>, transform_indices = @transform_1, window_bounds = array<i64: 3, 4, 64>}, {pipeline_mode = #tpu.pipeline_mode<synchronous>, transform_indices = @transform_2, window_bounds = array<i64: 1, 64>}, {pipeline_mode = #tpu.pipeline_mode<synchronous>, transform_indices = @transform_3, window_bounds = array<i64: 64, 64>}, {pipeline_mode = #tpu.pipeline_mode<synchronous>, transform_indices = @transform_4, window_bounds = array<i64: 1, 64>}, {pipeline_mode = #tpu.pipeline_mode<synchronous>, transform_indices = @transform_5, window_bounds = array<i64: 64, 64>}, {pipeline_mode = #tpu.pipeline_mode<synchronous>, transform_indices = @transform_6, window_bounds = array<i64: 1, 64>}, {pipeline_mode = #tpu.pipeline_mode<synchronous>, transform_indices = @transform_7, window_bounds = array<i64: 64, 12>}, {pipeline_mode = #tpu.pipeline_mode<synchronous>, transform_indices = @transform_8, window_bounds = array<i64: 1, 12>}, {transform_indices = @transform_9, window_bounds = array<i64: 2, 8, 4>}]} {
    %c0 = arith.constant 0 : index
    %c0_0 = arith.constant 0 : index
    %c0_1 = arith.constant 0 : index
    %0 = vector.load %arg1[%c0, %c0_0, %c0_1] : memref<2x8x4xf32, #tpu.memory_space<vmem>>, vector<2x8x4xf32>
    %1 = vector.extract_strided_slice %0 {offsets = [0, 0, 0], sizes = [2, 6, 4], strides = [1, 1, 1]} : vector<2x8x4xf32> to vector<2x6x4xf32>
    %2 = vector.shape_cast %1 : vector<2x6x4xf32> to vector<12x4xf32>
    %c0_2 = arith.constant 0 : index
    %c0_3 = arith.constant 0 : index
    %c0_4 = arith.constant 0 : index
    %3 = vector.load %arg2[%c0_2, %c0_3, %c0_4] : memref<3x4x64xf32, #tpu.memory_space<vmem>>, vector<1x4x64xf32>
    %4 = vector.shape_cast %3 : vector<1x4x64xf32> to vector<4x64xf32>
    %cst = arith.constant dense<0.000000e+00> : vector<12x64xf32>
    %5 = tpu.matmul %2, %4, %cst {dimension_numbers = #tpu.dot_dimension_numbers<[1], [0], [0], [1], [0, 0, 1, 1], [], []>} : vector<12x4xf32>, vector<4x64xf32>, vector<12x64xf32> -> vector<12x64xf32>
    %6 = vector.extract_strided_slice %0 {offsets = [0, 1, 0], sizes = [2, 6, 4], strides = [1, 1, 1]} : vector<2x8x4xf32> to vector<2x6x4xf32>
    %7 = vector.shape_cast %6 : vector<2x6x4xf32> to vector<12x4xf32>
    %c1 = arith.constant 1 : index
    %c0_5 = arith.constant 0 : index
    %c0_6 = arith.constant 0 : index
    %8 = vector.load %arg2[%c1, %c0_5, %c0_6] : memref<3x4x64xf32, #tpu.memory_space<vmem>>, vector<1x4x64xf32>
    %9 = vector.shape_cast %8 : vector<1x4x64xf32> to vector<4x64xf32>
    %cst_7 = arith.constant dense<0.000000e+00> : vector<12x64xf32>
    %10 = tpu.matmul %7, %9, %cst_7 {dimension_numbers = #tpu.dot_dimension_numbers<[1], [0], [0], [1], [0, 0, 1, 1], [], []>} : vector<12x4xf32>, vector<4x64xf32>, vector<12x64xf32> -> vector<12x64xf32>
    %11 = arith.addf %5, %10 : vector<12x64xf32>
    %12 = vector.extract_strided_slice %0 {offsets = [0, 2, 0], sizes = [2, 6, 4], strides = [1, 1, 1]} : vector<2x8x4xf32> to vector<2x6x4xf32>
    %13 = vector.shape_cast %12 : vector<2x6x4xf32> to vector<12x4xf32>
    %c2 = arith.constant 2 : index
    %c0_8 = arith.constant 0 : index
    %c0_9 = arith.constant 0 : index
    %14 = vector.load %arg2[%c2, %c0_8, %c0_9] : memref<3x4x64xf32, #tpu.memory_space<vmem>>, vector<1x4x64xf32>
    %15 = vector.shape_cast %14 : vector<1x4x64xf32> to vector<4x64xf32>
    %cst_10 = arith.constant dense<0.000000e+00> : vector<12x64xf32>
    %16 = tpu.matmul %13, %15, %cst_10 {dimension_numbers = #tpu.dot_dimension_numbers<[1], [0], [0], [1], [0, 0, 1, 1], [], []>} : vector<12x4xf32>, vector<4x64xf32>, vector<12x64xf32> -> vector<12x64xf32>
    %17 = arith.addf %11, %16 : vector<12x64xf32>
    %c0_11 = arith.constant 0 : index
    %c0_12 = arith.constant 0 : index
    %18 = vector.load %arg3[%c0_11, %c0_12] : memref<1x64xf32, #tpu.memory_space<vmem>>, vector<1x64xf32>
    %19 = vector.broadcast %18 : vector<1x64xf32> to vector<12x64xf32>
    %20 = arith.addf %17, %19 : vector<12x64xf32>
    %cst_13 = arith.constant dense<0.000000e+00> : vector<12xf32>
    %21 = vector.multi_reduction <add>, %20, %cst_13 [1] : vector<12x64xf32> to vector<12xf32>
    %22 = vector.shape_cast %21 : vector<12xf32> to vector<12x1xf32>
    %cst_14 = arith.constant 6.400000e+01 : f32
    %23 = vector.broadcast %cst_14 : f32 to vector<12x1xf32>
    %24 = arith.divf %22, %23 : vector<12x1xf32>
    %25 = vector.broadcast %24 : vector<12x1xf32> to vector<12x64xf32>
    %26 = arith.subf %20, %25 : vector<12x64xf32>
    %27 = arith.mulf %26, %26 : vector<12x64xf32>
    %cst_15 = arith.constant dense<0.000000e+00> : vector<12xf32>
    %28 = vector.multi_reduction <add>, %27, %cst_15 [1] : vector<12x64xf32> to vector<12xf32>
    %29 = vector.shape_cast %28 : vector<12xf32> to vector<12x1xf32>
    %cst_16 = arith.constant 0.0158730168 : f32
    %30 = vector.broadcast %cst_16 : f32 to vector<12x1xf32>
    %31 = arith.mulf %29, %30 : vector<12x1xf32>
    %cst_17 = arith.constant 9.99999974E-6 : f32
    %32 = vector.broadcast %cst_17 : f32 to vector<12x1xf32>
    %33 = arith.addf %31, %32 : vector<12x1xf32>
    %34 = math.rsqrt %33 : vector<12x1xf32>
    %35 = vector.broadcast %34 : vector<12x1xf32> to vector<12x64xf32>
    %36 = arith.mulf %26, %35 : vector<12x64xf32>
    %c0_18 = arith.constant 0 : index
    %c0_19 = arith.constant 0 : index
    %37 = vector.load %arg4[%c0_18, %c0_19] : memref<64x64xf32, #tpu.memory_space<vmem>>, vector<64x64xf32>
    %cst_20 = arith.constant dense<0.000000e+00> : vector<12x64xf32>
    %38 = tpu.matmul %36, %37, %cst_20 {dimension_numbers = #tpu.dot_dimension_numbers<[1], [0], [0], [1], [0, 0, 1, 1], [], []>} : vector<12x64xf32>, vector<64x64xf32>, vector<12x64xf32> -> vector<12x64xf32>
    %c0_21 = arith.constant 0 : index
    %c0_22 = arith.constant 0 : index
    %39 = vector.load %arg5[%c0_21, %c0_22] : memref<1x64xf32, #tpu.memory_space<vmem>>, vector<1x64xf32>
    %40 = vector.broadcast %39 : vector<1x64xf32> to vector<12x64xf32>
    %41 = arith.addf %38, %40 : vector<12x64xf32>
    %cst_23 = arith.constant 0.000000e+00 : f32
    %42 = vector.broadcast %cst_23 : f32 to vector<12x64xf32>
    %43 = arith.maximumf %41, %42 : vector<12x64xf32>
    %c0_24 = arith.constant 0 : index
    %c0_25 = arith.constant 0 : index
    %44 = vector.load %arg6[%c0_24, %c0_25] : memref<64x64xf32, #tpu.memory_space<vmem>>, vector<64x64xf32>
    %cst_26 = arith.constant dense<0.000000e+00> : vector<12x64xf32>
    %45 = tpu.matmul %43, %44, %cst_26 {dimension_numbers = #tpu.dot_dimension_numbers<[1], [0], [0], [1], [0, 0, 1, 1], [], []>} : vector<12x64xf32>, vector<64x64xf32>, vector<12x64xf32> -> vector<12x64xf32>
    %c0_27 = arith.constant 0 : index
    %c0_28 = arith.constant 0 : index
    %46 = vector.load %arg7[%c0_27, %c0_28] : memref<1x64xf32, #tpu.memory_space<vmem>>, vector<1x64xf32>
    %47 = vector.broadcast %46 : vector<1x64xf32> to vector<12x64xf32>
    %48 = arith.addf %45, %47 : vector<12x64xf32>
    %49 = arith.addf %20, %48 : vector<12x64xf32>
    %c0_29 = arith.constant 0 : index
    %c0_30 = arith.constant 0 : index
    %50 = vector.load %arg8[%c0_29, %c0_30] : memref<64x12xf32, #tpu.memory_space<vmem>>, vector<64x12xf32>
    %cst_31 = arith.constant dense<0.000000e+00> : vector<12x12xf32>
    %51 = tpu.matmul %49, %50, %cst_31 {dimension_numbers = #tpu.dot_dimension_numbers<[1], [0], [0], [1], [0, 0, 1, 1], [], []>} : vector<12x64xf32>, vector<64x12xf32>, vector<12x12xf32> -> vector<12x12xf32>
    %c0_32 = arith.constant 0 : index
    %c0_33 = arith.constant 0 : index
    %52 = vector.load %arg9[%c0_32, %c0_33] : memref<1x12xf32, #tpu.memory_space<vmem>>, vector<1x12xf32>
    %53 = vector.broadcast %52 : vector<1x12xf32> to vector<12x12xf32>
    %54 = arith.addf %51, %53 : vector<12x12xf32>
    %55 = vector.shape_cast %54 : vector<12x12xf32> to vector<2x6x12xf32>
    %56 = vector.extract_strided_slice %55 {offsets = [0, 0, 4], sizes = [2, 6, 4], strides = [1, 1, 1]} : vector<2x6x12xf32> to vector<2x6x4xf32>
    %c0_34 = arith.constant 0 : index
    %c1_35 = arith.constant 1 : index
    %c0_36 = arith.constant 0 : index
    %57 = vector.load %arg10[%c0_34, %c1_35, %c0_36] : memref<2x8x4xf32, #tpu.memory_space<vmem>>, vector<2x6x4xf32>
    tpu.vector_store %arg10[%c0_34, %c1_35, %c0_36], %56 {strides = array<i32>} : memref<2x8x4xf32, #tpu.memory_space<vmem>>, vector<2x6x4xf32>,
    %58 = vector.extract_strided_slice %55 {offsets = [0, 0, 0], sizes = [2, 1, 4], strides = [1, 1, 1]} : vector<2x6x12xf32> to vector<2x1x4xf32>
    %59 = vector.shape_cast %58 : vector<2x1x4xf32> to vector<2x4xf32>
    %60 = vector.shape_cast %59 : vector<2x4xf32> to vector<2x1x4xf32>
    %c0_37 = arith.constant 0 : index
    %c0_38 = arith.constant 0 : index
    %c0_39 = arith.constant 0 : index
    %61 = vector.load %arg10[%c0_37, %c0_38, %c0_39] : memref<2x8x4xf32, #tpu.memory_space<vmem>>, vector<2x1x4xf32>
    tpu.vector_store %arg10[%c0_37, %c0_38, %c0_39], %60 {strides = array<i32>} : memref<2x8x4xf32, #tpu.memory_space<vmem>>, vector<2x1x4xf32>,
    %62 = vector.extract_strided_slice %55 {offsets = [0, 5, 8], sizes = [2, 1, 4], strides = [1, 1, 1]} : vector<2x6x12xf32> to vector<2x1x4xf32>
    %63 = vector.shape_cast %62 : vector<2x1x4xf32> to vector<2x4xf32>
    %64 = vector.shape_cast %63 : vector<2x4xf32> to vector<2x1x4xf32>
    %c0_40 = arith.constant 0 : index
    %c7 = arith.constant 7 : index
    %c0_41 = arith.constant 0 : index
    %65 = vector.load %arg10[%c0_40, %c7, %c0_41] : memref<2x8x4xf32, #tpu.memory_space<vmem>>, vector<2x1x4xf32>
    tpu.vector_store %arg10[%c0_40, %c7, %c0_41], %64 {strides = array<i32>} : memref<2x8x4xf32, #tpu.memory_space<vmem>>, vector<2x1x4xf32>,
    return
  }
  func.func @transform_0(%arg0: i32) -> (i32, i32, i32) {
    %c0_i32 = arith.constant 0 : i32
    %c0_i32_0 = arith.constant 0 : i32
    %c0_i32_1 = arith.constant 0 : i32
    return %arg0, %c0_i32, %c0_i32_0 : i32, i32, i32
  }
  func.func @transform_1(%arg0: i32) -> (i32, i32, i32) {
    %c0_i32 = arith.constant 0 : i32
    %c0_i32_0 = arith.constant 0 : i32
    %c0_i32_1 = arith.constant 0 : i32
    %c0_i32_2 = arith.constant 0 : i32
    return %c0_i32, %c0_i32_0, %c0_i32_1 : i32, i32, i32
  }
  func.func @transform_2(%arg0: i32) -> (i32, i32) {
    %c0_i32 = arith.constant 0 : i32
    %c0_i32_0 = arith.constant 0 : i32
    %c0_i32_1 = arith.constant 0 : i32
    return %c0_i32, %c0_i32_0 : i32, i32
  }
  func.func @transform_3(%arg0: i32) -> (i32, i32) {
    %c0_i32 = arith.constant 0 : i32
    %c0_i32_0 = arith.constant 0 : i32
    %c0_i32_1 = arith.constant 0 : i32
    return %c0_i32, %c0_i32_0 : i32, i32
  }
  func.func @transform_4(%arg0: i32) -> (i32, i32) {
    %c0_i32 = arith.constant 0 : i32
    %c0_i32_0 = arith.constant 0 : i32
    %c0_i32_1 = arith.constant 0 : i32
    return %c0_i32, %c0_i32_0 : i32, i32
  }
  func.func @transform_5(%arg0: i32) -> (i32, i32) {
    %c0_i32 = arith.constant 0 : i32
    %c0_i32_0 = arith.constant 0 : i32
    %c0_i32_1 = arith.constant 0 : i32
    return %c0_i32, %c0_i32_0 : i32, i32
  }
  func.func @transform_6(%arg0: i32) -> (i32, i32) {
    %c0_i32 = arith.constant 0 : i32
    %c0_i32_0 = arith.constant 0 : i32
    %c0_i32_1 = arith.constant 0 : i32
    return %c0_i32, %c0_i32_0 : i32, i32
  }
  func.func @transform_7(%arg0: i32) -> (i32, i32) {
    %c0_i32 = arith.constant 0 : i32
    %c0_i32_0 = arith.constant 0 : i32
    %c0_i32_1 = arith.constant 0 : i32
    return %c0_i32, %c0_i32_0 : i32, i32
  }
  func.func @transform_8(%arg0: i32) -> (i32, i32) {
    %c0_i32 = arith.constant 0 : i32
    %c0_i32_0 = arith.constant 0 : i32
    %c0_i32_1 = arith.constant 0 : i32
    return %c0_i32, %c0_i32_0 : i32, i32
  }
  func.func @transform_9(%arg0: i32) -> (i32, i32, i32) {
    %c0_i32 = arith.constant 0 : i32
    %c0_i32_0 = arith.constant 0 : i32
    %c0_i32_1 = arith.constant 0 : i32
    return %arg0, %c0_i32, %c0_i32_0 : i32, i32, i32
  }
}

</mosaic_0001>

<bundles_post_ra>
// kernel: _lambda_.1
= control target key start
LH: loop header
LB: loop body
LE: loop exit
PB: predicated region body
PF: predicated region fallthrough
CT: control target
= control target key end

     0   :  { %14 = vsyncpa [#allocation3], 0  ;;  %s1460_s0 = inlined_call_operand.vmem [shape: f32[2,8,4], index: 0, kind: input, shape index: {}]   ;;  %s1461_s1 = inlined_call_operand.hbm [shape: f32[3,4,64], index: 1, kind: input, shape index: {}]   ;;  %s1462_s2 = inlined_call_operand.vmem [shape: f32[1,64], index: 2, kind: input, shape index: {}]   ;;  %s1463_s3 = inlined_call_operand.hbm [shape: f32[64,64], index: 3, kind: input, shape index: {}]   ;;  %s1464_s4 = inlined_call_operand.hbm [shape: f32[1,64], index: 4, kind: input, shape index: {}]   ;;  %s1465_s5 = inlined_call_operand.vmem [shape: f32[64,64], index: 5, kind: input, shape index: {}]   ;;  %s1466_s6 = inlined_call_operand.hbm [shape: f32[1,64], index: 6, kind: input, shape index: {}]   ;;  %s1467_s7 = inlined_call_operand.vmem [shape: f32[64,12], index: 7, kind: input, shape index: {}]   ;;  %s1468_s8 = inlined_call_operand.vmem [shape: f32[1,12], index: 8, kind: input, shape index: {}]   ;;  %s1469_s9 = inlined_call_operand.vmem [shape: f32[2,8,4], index: 9, kind: output, shape index: {}]  }
   0x1   :  { %15 = vsyncpa [#allocation5], 0 }
   0x2   :  { %16 = vsyncpa [#allocation8], 0  ;;  %s1201_s30 = smov [#allocation4]   ;;  %s1107_s13 = scalar_lea.hbm %s1463_s3, 1024 }
   0x3   :  { %s38_s10 = sshll.u32 %s1201_s30, 4  ;;  %p1108_p0 = scmp.ne.s32.totalorder %s1463_s3, %s1107_s13  ;;  %s39_s10 = int_to_ptr.vmem [resolvable:$true] %s38_s10 }
   0x4   :  { %p1111_p1 = scmp.lt.u32.totalorder %s1107_s13, %s1463_s3 }
   0x6   :  { %p1113_p2 = pnand %p1111_p1, %p1108_p0 }
   0x8   :  { %1116 = shalt.err (!%p1113_p2)
}
   0x9   :  { %s1117_s18 = scalar_lea.vmem %s39_s10, 1024  ;;  %p1122_p4 = scmp.lt.s32.totalorder %s39_s10, %s39_s10 }
   0xa   :  { %p1118_p3 = scmp.ne.s32.totalorder %s39_s10, %s1117_s18  ;;  %p1123_p5 = scmp.lt.s32.totalorder %s1117_s18, %s1117_s18 }
   0xc   :  { %p1124_p6 = por %p1123_p5, %p1122_p4 }
   0xe   :  { %p1125_p7 = pnand %p1124_p6, %p1118_p3 }
  0x10   :  { %1128 = shalt.err (!%p1125_p7)
}
  0x11   :  { %s1202_s19 = smov 128   ;;  %s1203_s20 = smov 8  }
  0x12   :  { %44 = dma.hbm_to_vmem [thread:$0]  %s1463_s3, 1024, %s39_s10, [#allocation5], %s1202_s19, %s1202_s19, %s1203_s20  }
  0x13   :  { %s1204_s23 = smov [#allocation2]   ;;  %s1129_s27 = scalar_lea.hbm %s1461_s1, 192 }
  0x14   :  { %s24_s24 = sshll.u32 %s1204_s23, 4  ;;  %p1130_p8 = scmp.ne.s32.totalorder %s1461_s1, %s1129_s27  ;;  %s25_s24 = int_to_ptr.vmem [resolvable:$true] %s24_s24 }
  0x15   :  { %p1133_p9 = scmp.lt.u32.totalorder %s1129_s27, %s1461_s1 }
  0x17   :  { %p1135_p10 = pnand %p1133_p9, %p1130_p8 }
  0x19   :  { %1138 = shalt.err (!%p1135_p10)
}
  0x1a   :  { %s1139_s12 = scalar_lea.vmem %s25_s24, 192  ;;  %p1144_p12 = scmp.lt.s32.totalorder %s25_s24, %s25_s24 }
  0x1b   :  { %p1140_p11 = scmp.ne.s32.totalorder %s25_s24, %s1139_s12  ;;  %p1145_p13 = scmp.lt.s32.totalorder %s1139_s12, %s1139_s12 }
  0x1d   :  { %p1146_p0 = por %p1145_p13, %p1144_p12 }
  0x1f   :  { %p1147_p1 = pnand %p1146_p0, %p1140_p11 }
  0x21   :  { %1150 = shalt.err (!%p1147_p1)
}
  0x22   :  { %s1205_s3 = smov 64   ;;  %s1206_s10 = smov 4  }
  0x23   :  { %30 = dma.hbm_to_vmem [thread:$0]  %s1461_s1, 192, %s25_s24, [#allocation3], %s1205_s3, %s1205_s3, %s1206_s10  }
  0x24   :  { %s1207_s15 = smov [#allocation6]   ;;  %s1208_s17 = smov [#allocation7]  }
  0x25   :  { %s51_s16 = sshll.u32 %s1207_s15, 4  ;;  %s63_s18 = sshll.u32 %s1208_s17, 4  ;;  %s52_s16 = int_to_ptr.vmem [resolvable:$true] %s51_s16  ;;  %s64_s18 = int_to_ptr.vmem [resolvable:$true] %s63_s18 }
  0x26   :  { %s1151_s21 = scalar_lea.hbm %s1464_s4, 16 }
  0x27   :  { %p1152_p2 = scmp.ne.s32.totalorder %s1464_s4, %s1151_s21  ;;  %p1155_p3 = scmp.lt.u32.totalorder %s1151_s21, %s1464_s4 }
  0x29   :  { %p1157_p4 = pnand %p1155_p3, %p1152_p2 }
  0x2b   :  { %1160 = shalt.err (!%p1157_p4)
}
  0x2c   :  { %s1161_s1 = scalar_lea.vmem %s52_s16, 16  ;;  %s1165_s24 = scalar_lea.vmem %s52_s16, 32 }
  0x2d   :  { %p1162_p5 = scmp.ne.s32.totalorder %s52_s16, %s1161_s1  ;;  %p1166_p6 = scmp.lt.s32.totalorder %s52_s16, %s52_s16 }
  0x2e   :  { %p1167_p7 = scmp.lt.s32.totalorder %s1165_s24, %s1161_s1 }
  0x30   :  { %p1168_p8 = por %p1167_p7, %p1166_p6 }
  0x32   :  { %p1169_p9 = pnand %p1168_p8, %p1162_p5 }
  0x34   :  { %1172 = shalt.err (!%p1169_p9)
}
  0x35   :  { %54 = dma.hbm_to_vmem [thread:$0]  %s1464_s4, 16, %s52_s16, [#allocation5]  }
  0x36   :  { %s1173_s11 = scalar_lea.hbm %s1466_s6, 16 }
  0x37   :  { %p1174_p10 = scmp.ne.s32.totalorder %s1466_s6, %s1173_s11  ;;  %p1177_p11 = scmp.lt.u32.totalorder %s1173_s11, %s1466_s6 }
  0x39   :  { %p1179_p12 = pnand %p1177_p11, %p1174_p10 }
  0x3b   :  { %1182 = shalt.err (!%p1179_p12)
}
  0x3c   :  { %s1183_s14 = scalar_lea.vmem %s64_s18, 16  ;;  %s1187_s15 = scalar_lea.vmem %s64_s18, 32 }
  0x3d   :  { %p1184_p13 = scmp.ne.s32.totalorder %s64_s18, %s1183_s14  ;;  %p1188_p0 = scmp.lt.s32.totalorder %s64_s18, %s64_s18 }
  0x3e   :  { %p1189_p1 = scmp.lt.s32.totalorder %s1187_s15, %s1183_s14 }
  0x40   :  { %p1190_p2 = por %p1189_p1, %p1188_p0 }
  0x42   :  { %p1191_p3 = pnand %p1190_p2, %p1184_p13 }
  0x44   :  { %1194 = shalt.err (!%p1191_p3)
}
  0x45   :  { %66 = dma.hbm_to_vmem [thread:$0]  %s1466_s6, 16, %s64_s18, [#allocation8]  }
  0x46   :  { %1195 = dma.done.wait [#allocation3], 192  }
  0x47   :  { %1196 = vsyncadd [#allocation3], 4294967104 }
  0x48   :  { %1197 = dma.done.wait [#allocation5], 1040  }
  0x49   :  { %1198 = vsyncadd [#allocation5], 4294966256 }
  0x4a   :  { %1199 = dma.done.wait [#allocation8], 16  }
  0x4b   :  { %1200 = vsyncadd [#allocation8], 4294967280  ;;  %v91_v0 = vlaneseq  ;;  %v1209_v1 = vmov 1983009808   ;;  %vm122_vm0 = vcmask 1040384   ;;  %vm123_vm1 = vcmask 1042434  }
  0x4c   :  { %v89_v2 = vunpack.c.l.s4 %v1209_v1  ;;  %vm181_vm2 = vcmask 1043456   ;;  %vm124_vm3 = vmor %vm122_vm0, %vm123_vm1  ;;  %vm125_vm4 = vcmask 1044484   ;;  %v150_v6 = vld [vmem:[#allocation2 + $0x4] sm:$0xf]  ;;  %v84_v8 = vld [vmem:[%s1460_s0 + $0x8] sm:$0xff]  ;;  %vm127_vm5 = vcmask 1046534  }
  0x4d   :  { %v1310_v3 = vshrl.u32 %v91_v0, 7  ;;  %v83_v7 = vld [vmem:[%s1460_s0] sm:$0xff]  ;;  %966 = vmatprep.subr.msk.mxu0 %vm181_vm2, %v150_v6  ;;  %v103_v11 = vcombine.high %v84_v8, %v84_v8  ;;  %vm126_vm6 = vmor %vm124_vm3, %vm125_vm4  ;;  %vm176_vm8 = vcmask 31744   ;;  %v368_v53 = vld [vmem:[#allocation2 + $0x8] sm:$0xf]  ;;  %vm487_vm9 = vcmask 523264  }
  0x4e   :  { %v90_v4 = vunpack.c.0.s8 %v89_v2  ;;  %v87_v9 = vcombine.high %v83_v7, %v83_v7  ;;  %v119_v13 = vld [vmem:[#allocation2] sm:$0xf]  ;;  %967 = vmatpush3.msk.msra.mxu0 %vm181_vm2, %v150_v6  ;;  %vm1327_vm7 = vmor %vm126_vm6, %vm127_vm5  ;;  %vm491_vm10 = vcmask 519168   ;;  %vm878_vm11 = vcmask 24576   ;;  %s1210_s27 = smov 120   ;;  %s1211_s28 = smov 124  }
  0x4f   :  { %971 = vmatprep.subr.msk.mxu0 %vm181_vm2, %v119_v13  ;;  %v917_v61 = vld [vmem:[%s1462_s2] ss:$0 sm:$0xff]  ;;  %vm895_vm12 = vcmask 25601   ;;  %vm875_vm13 = vcmask 29696  }
  0x50   :  { %v1313_v5 = vsub.s32 %v90_v4, %v1310_v3 }
  0x52   :  { %v94_v10 = vrot.slane %v83_v7, %v1313_v5  ;;  %v110_v12 = vrot.slane %v84_v8, %v1313_v5  ;;  %v101_v14 = vrot.slane %v87_v9, %v1313_v5  ;;  %v117_v20 = vrot.slane %v103_v11, %v1313_v5 }
  0x54   :  { %v102_v15 = vcombine.high %v94_v10, %v94_v10  ;;  %v118_v16 = vcombine.high %v110_v12, %v110_v12  ;;  %v905_v17 = vrot.slane %v94_v10, 9  ;;  %v906_v19 = vrot.slane %v110_v12, 9 }
  0x55   :  { %v120_v21 = vcombine.high %v101_v14, %v101_v14  ;;  %v134_v23 = vrot.slane %v101_v14, 7  ;;  %v121_v25 = vcombine.high %v117_v20, %v117_v20  ;;  %v144_v26 = vrot.slane %v117_v20, 7 }
  0x56   :  { %v131_v22 = vrot.slane %v102_v15, 7  ;;  %v141_v24 = vrot.slane %v118_v16, 7  ;;  %v260_v27 = vcombine.low %v94_v10, %v102_v15  ;;  %v261_v28 = vcombine.low %v101_v14, %v110_v12 }
  0x57   :  { %v136_v31 = vrot.slane %v134_v23, 2  ;;  %v137_v32 = vrot.slane %v120_v21, 7  ;;  %v146_v35 = vrot.slane %v144_v26, 2  ;;  %v147_v36 = vrot.slane %v121_v25, 7 }
  0x58   :  { %v132_v29 = vsel %vm1327_vm7, %v905_v17, %v131_v22  ;;  %v133_v30 = vrot.slane %v131_v22, 2  ;;  %v142_v33 = vsel %vm1327_vm7, %v906_v19, %v141_v24  ;;  %v143_v34 = vrot.slane %v141_v24, 2  ;;  %v517_v17 = vld [vmem:[#allocation4 + $0x8] sm:$0xff]  ;;  %v518_v19 = vld [vmem:[#allocation4 + $0x10] sm:$0xff]  ;;  %v520_v22 = vld [vmem:[#allocation4 + $0x20] sm:$0xff] }
  0x59   :  { %v138_v38 = vsel %vm1327_vm7, %v136_v31, %v137_v32  ;;  %v268_v39 = vrot.slane %v260_v27, %v1313_v5  ;;  %v275_v40 = vrot.slane %v261_v28, %v1313_v5  ;;  %v148_v44 = vsel %vm1327_vm7, %v146_v35, %v147_v36  ;;  %v522_v24 = vld [vmem:[#allocation4 + $0x30] sm:$0xff]  ;;  %v619_v35 = vld [vmem:[%s1465_s5 + $0x28] sm:$0xff] }
  0x5a   :  { %v135_v37 = vsel %vm1327_vm7, %v133_v30, %v134_v23  ;;  %v152_v42 = vcombine.low %v138_v38, %v142_v33  ;;  %v145_v43 = vsel %vm1327_vm7, %v143_v34, %v144_v26  ;;  %v369_v51 = vcombine.low %v102_v15, %v101_v14  ;;  %v521_v23 = vld [vmem:[#allocation4 + $0x28] sm:$0xff]  ;;  %v523_v26 = vld [vmem:[#allocation4 + $0x38] sm:$0xff] }
  0x5b   :  { %v151_v41 = vcombine.low %v132_v29, %v135_v37  ;;  %v168_v45 = vcombine.low %v145_v43, %v148_v44  ;;  %v276_v50 = vcombine.low %v268_v39, %v275_v40  ;;  %v913_v52 = vcombine.high %v101_v14, %v110_v12  ;;  %v614_v28 = vld [vmem:[%s1465_s5] sm:$0xff]  ;;  %v615_v29 = vld [vmem:[%s1465_s5 + $0x8] sm:$0xff]  ;;  %v616_v30 = vld [vmem:[%s1465_s5 + $0x10] sm:$0xff] }
  0x5c   :  { %v166_v47 = vrot.slane %v152_v42, %v1313_v5  ;;  %v277_v54 = vcombine.low %v118_v16, %v117_v20  ;;  %v377_v55 = vrot.slane %v369_v51, %v1313_v5  ;;  %v386_v59 = vcombine.low %v117_v20, %v121_v25  ;;  %v516_v16 = vld [vmem:[#allocation4] sm:$0xff]  ;;  %v519_v20 = vld [vmem:[#allocation4 + $0x18] sm:$0xff]  ;;  %v617_v32 = vld [vmem:[%s1465_s5 + $0x18] sm:$0xff] }
  0x5d   :  { %v159_v46 = vrot.slane %v151_v41, %v1313_v5  ;;  %v175_v48 = vrot.slane %v168_v45, %v1313_v5  ;;  %v384_v56 = vrot.slane %v913_v52, %v1313_v5  ;;  %v1038_v18 = vpack.c.bf16 %v517_v17, %v516_v16  ;;  %v618_v34 = vld [vmem:[%s1465_s5 + $0x20] sm:$0xff]  ;;  %v713_v51 = vld [vmem:[%s1467_s7 + $0x8] sm:$0xff]  ;;  %v714_v52 = vld [vmem:[%s1467_s7 + $0x10] sm:$0xff] }
  0x5e   :  { %v284_v57 = vrot.slane %v277_v54, %v1313_v5  ;;  %v393_v60 = vrot.slane %v386_v59, %v1313_v5  ;;  %v1042_v21 = vpack.c.bf16 %v519_v20, %v518_v19  ;;  %v1046_v25 = vpack.c.bf16 %v521_v23, %v520_v22  ;;  %v715_v54 = vld [vmem:[%s1467_s7 + $0x18] sm:$0xff]  ;;  %v918_v59 = vld [vmem:[#allocation6] ss:$0 sm:$0xff]  ;;  %v924_v16 = vld [vmem:[%s1468_s8] ss:$0 sm:$0xff] }
  0x5f   :  { %v167_v49 = vcombine.low %v159_v46, %v166_v47  ;;  %v385_v58 = vcombine.low %v377_v55, %v384_v56  ;;  %1039 = vmatprep.subr.bf16.mxu1 %v1038_v18  ;;  %v1050_v27 = vpack.c.bf16 %v523_v26, %v522_v24  ;;  %v1054_v31 = vpack.c.bf16 %v615_v29, %v614_v28  ;;  %v620_v47 = vld [vmem:[%s1465_s5 + $0x30] sm:$0xff]  ;;  %v716_v56 = vld [vmem:[%s1467_s7 + $0x20] sm:$0xff] }
  0x60   :  { %1041 = vmatpush3.bf16.msra.mxu1 %v1038_v18  ;;  %v1058_v33 = vpack.c.bf16 %v617_v32, %v616_v30  ;;  %v1062_v36 = vpack.c.bf16 %v619_v35, %v618_v34  ;;  %v1074_v55 = vpack.c.bf16 %v715_v54, %v714_v52 }
  0x61   :  { %968 = vmatprep.mubr.msk.f32.mxu0 %vm176_vm8, %v167_v49  ;;  %1043 = vmatprep.subr.bf16.mxu1 %v1042_v21 }
  0x62   :  { %969 = vmatmul.mubr.msk.f32.vlgmr.msra.gmra.mrb[0].mxu0 %vm176_vm8, %v175_v48  ;;  %v621_v48 = vld [vmem:[%s1465_s5 + $0x38] sm:$0xff] }
  0x63   :  { %972 = vmatpush3.msk.msra.mxu0 %vm181_vm2, %v119_v13  ;;  %973 = vmatprep.mubr.msk.f32.mxu0 %vm176_vm8, %v276_v50  ;;  %v1066_v49 = vpack.c.bf16 %v621_v48, %v620_v47  ;;  %v712_v50 = vld [vmem:[%s1467_s7] sm:$0xff] }
  0x64   :  { %976 = vmatprep.subr.msk.mxu0 %vm181_vm2, %v368_v53  ;;  %1045 = vmatpush3.bf16.msra.mxu1 %v1042_v21 }
  0x65   :  { %1047 = vmatprep.subr.bf16.mxu1 %v1046_v25 }
  0x68   :  { %1049 = vmatpush3.bf16.msra.mxu1 %v1046_v25 }
  0x69   :  { %1051 = vmatprep.subr.bf16.mxu1 %v1050_v27 }
  0x6a   :  { %974 = vmatmul.mubr.msk.f32.vlgmr.msra.gmra.mrb[0].mxu0 %vm176_vm8, %v284_v57  ;;  %v717_v57 = vld [vmem:[%s1467_s7 + $0x28] sm:$0xff] }
  0x6b   :  { %977 = vmatpush3.msk.msra.mxu0 %vm181_vm2, %v368_v53  ;;  %978 = vmatprep.mubr.msk.f32.mxu0 %vm176_vm8, %v385_v58  ;;  %v1070_v53 = vpack.c.bf16 %v713_v51, %v712_v50  ;;  %v1078_v58 = vpack.c.bf16 %v717_v57, %v716_v56 }
  0x6c   :  { %1053 = vmatpush3.bf16.msra.mxu1 %v1050_v27  ;;  %1055 = vmatprep.subr.bf16.mxu0 %v1054_v31 }
  0x6d   :  { %1071 = vmatprep.subr.bf16.mxu1 %v1070_v53 }
  0x72   :  { %979 = vmatmul.mubr.msk.f32.vlgmr.msra.gmra.mrb[0].mxu0 %vm176_vm8, %v393_v60 }
  0x73   :  { %1057 = vmatpush3.bf16.msra.mxu0 %v1054_v31 }
  0x74   :  { %1059 = vmatprep.subr.bf16.mxu0 %v1058_v33 }
  0x77   :  { %1061 = vmatpush3.bf16.msra.mxu0 %v1058_v33 }
  0x78   :  { %1063 = vmatprep.subr.bf16.mxu0 %v1062_v36 }
  0x7b   :  { %1065 = vmatpush3.bf16.msra.mxu0 %v1062_v36 }
  0x7c   :  { %1067 = vmatprep.subr.bf16.mxu0 %v1066_v49 }
  0x7f   :  { %1069 = vmatpush3.bf16.msra.mxu0 %v1066_v49 }
 0x145   :  { %v980_v62 = vpop.f32.mrb[0].mxu0 }
 0x146   :  { %v467_v63 = vpop.f32.mrb[1].mxu0  ;;  %v1367_v1 = vadd.f32 %v980_v62, %v917_v61 }
 0x147   :  { %v1365_v0 = vadd.f32 %v917_v61, %v467_v63 }
 0x148   :  { %v492_v4 = vsel %vm491_vm10, %v1367_v1, 0.0 }
 0x149   :  { %v488_v2 = vsel %vm487_vm9, %v1365_v0, 0.0 }
 0x14a   :  { %489 = vadd.xlane.f32.xlu0 %v488_v2 }
 0x14e   :  { %493 = vadd.xlane.f32.xlu0 %v492_v4 }
 0x1d7   :  { %v490_v6 = vpop.xlane.xlu0 %489 }
 0x1d8   :  { %v496_v7 = vmul.f32 0.015625, %v490_v6  ;;  %v718_v6 = vld [vmem:[%s1467_s7 + $0x30] sm:$0xff] }
 0x1da   :  { %v498_v8 = vsub.f32 %v1365_v0, %v496_v7  ;;  %v719_v7 = vld [vmem:[%s1467_s7 + $0x38] sm:$0xff] }
 0x1db   :  { %v494_v9 = vpop.xlane.xlu0 %493 }
 0x1dc   :  { %v497_v10 = vmul.f32 0.015625, %v494_v9  ;;  %v500_v11 = vmul.f32 %v498_v8, %v498_v8  ;;  %v921_v9 = vld [vmem:[#allocation7] ss:$0 sm:$0xff] }
 0x1de   :  { %v499_v12 = vsub.f32 %v1367_v1, %v497_v10  ;;  %v502_v13 = vsel %vm487_vm9, %v500_v11, 0.0 }
 0x1df   :  { %503 = vadd.xlane.f32.xlu1 %v502_v13 }
 0x1e0   :  { %v501_v14 = vmul.f32 %v499_v12, %v499_v12 }
 0x1e2   :  { %v505_v15 = vsel %vm491_vm10, %v501_v14, 0.0 }
 0x1e3   :  { %506 = vadd.xlane.f32.xlu1 %v505_v15 }
 0x26c   :  { %v504_v37 = vpop.xlane.xlu1 %503 }
 0x26d   :  { %v508_v38 = vmul.f32 0.015873017, %v504_v37 }
 0x26f   :  { %v510_v39 = vadd.f32 1e-05, %v508_v38 }
 0x270   :  { %v507_v40 = vpop.xlane.xlu1 %506 }
 0x271   :  { %1103 = vrsqrt.f32 %v510_v39  ;;  %v509_v41 = vmul.f32 0.015873017, %v507_v40 }
 0x273   :  { %v511_v42 = vadd.f32 1e-05, %v509_v41 }
 0x275   :  { %1105 = vrsqrt.f32 %v511_v42 }
 0x27b   :  { %v1104_v43 = vpop.eup %1103 }
 0x27c   :  { %v514_v44 = vmul.f32 %v1104_v43, %v498_v8  ;;  %v1082_v8 = vpack.c.bf16 %v719_v7, %v718_v6 }
 0x27e   :  { %997 = vmatprep.mubr.msk.f32.mxu1 %vm487_vm9, %v514_v44 }
 0x27f   :  { %v1106_v45 = vpop.eup %1105 }
 0x280   :  { %v515_v46 = vmul.f32 %v1106_v45, %v499_v12 }
 0x282   :  { %998 = vmatmul.mubr.msk.f32.vlgmr.msra.gmra.mrb[0].mxu1 %vm487_vm9, %v515_v46 }
 0x283   :  { %1073 = vmatpush3.bf16.msra.mxu1 %v1070_v53 }
 0x284   :  { %1075 = vmatprep.subr.bf16.mxu1 %v1074_v55 }
 0x287   :  { %1077 = vmatpush3.bf16.msra.mxu1 %v1074_v55 }
 0x288   :  { %1079 = vmatprep.subr.bf16.mxu1 %v1078_v58 }
 0x28b   :  { %1081 = vmatpush3.bf16.msra.mxu1 %v1078_v58 }
 0x28c   :  { %1083 = vmatprep.subr.bf16.mxu1 %v1082_v8 }
 0x28f   :  { %1085 = vmatpush3.bf16.msra.mxu1 %v1082_v8 }
 0x355   :  { %v999_v60 = vpop.f32.mrb[0].mxu1 }
 0x356   :  { %v609_v61 = vadd.f32 %v999_v60, %v918_v59  ;;  %v603_v62 = vpop.f32.mrb[1].mxu1 }
 0x357   :  { %v604_v63 = vadd.f32 %v918_v59, %v603_v62 }
 0x358   :  { %v613_v4 = vmax.f32 %v609_v61, 0.0 }
 0x359   :  { %v612_v2 = vmax.f32 %v604_v63, 0.0 }
 0x35b   :  { %1016 = vmatprep.mubr.msk.f32.mxu0 %vm487_vm9, %v612_v2 }
 0x35c   :  { %1017 = vmatmul.mubr.msk.f32.vlgmr.msra.gmra.mrb[2].mxu0 %vm487_vm9, %v613_v4 }
 0x42f   :  { %v1018_v10 = vpop.f32.mrb[2].mxu0 }
 0x430   :  { %v707_v11 = vadd.f32 %v1018_v10, %v921_v9  ;;  %v701_v12 = vpop.f32.mrb[3].mxu0 }
 0x431   :  { %v702_v13 = vadd.f32 %v921_v9, %v701_v12 }
 0x432   :  { %v711_v15 = vadd.f32 %v707_v11, %v1367_v1  ;;  %v883_v1 = vsub.s32 1, %v1310_v3 }
 0x433   :  { %v710_v14 = vadd.f32 %v702_v13, %v1365_v0 }
 0x435   :  { %1035 = vmatprep.mubr.msk.f32.mxu1 %vm487_vm9, %v710_v14 }
 0x436   :  { %1036 = vmatmul.mubr.msk.f32.vlgmr.msra.gmra.mrb[2].mxu1 %vm487_vm9, %v711_v15 }
 0x509   :  { %v1037_v17 = vpop.f32.mrb[2].mxu1 }
 0x50a   :  { %v805_v18 = vadd.f32 %v1037_v17, %v924_v16  ;;  %v799_v19 = vpop.f32.mrb[3].mxu1 }
 0x50b   :  { %v800_v20 = vadd.f32 %v924_v16, %v799_v19 }
 0x50c   :  { %v833_v21 = vrot.slane %v805_v18, %v1313_v5 }
 0x50d   :  { %v810_v22 = vcombine.high %v800_v20, %v800_v20  ;;  %v817_v0 = vrot.slane %v800_v20, %v1313_v5 }
 0x50e   :  { %v834_v25 = vcombine.high %v833_v21, %v833_v21 }
 0x50f   :  { %v824_v23 = vrot.slane %v810_v22, %v1313_v5  ;;  %v825_v24 = vcombine.high %v817_v0, %v817_v0  ;;  %879 = vst.msk [vmem:[%s1469_s9] sm:$0x1] %vm878_vm11, %v817_v0 }
 0x510   :  { %v867_v33 = vrot.slane %v834_v25, %v1313_v5  ;;  %v888_v35 = vrot.slane %v834_v25, %v883_v1 }
 0x511   :  { %v826_v26 = vcombine.high %v824_v23, %v824_v23  ;;  %v837_v27 = vcombine.low %v817_v0, %v825_v24  ;;  %v884_v28 = vrot.slane %v824_v23, %v883_v1  ;;  %v851_v3 = vrot.slane %v824_v23, %v1313_v5 }
 0x513   :  { %880 = vst.msk [vmem:[%s1469_s9 + $0x8] sm:$0x1] %vm878_vm11, %v826_v26  ;;  %889 = vrot.lane.b32.xlu1 %v884_v28, %s1210_s27  ;;  %v844_v29 = vrot.slane %v837_v27, %v1313_v5  ;;  %v853_v30 = vcombine.low %v826_v26, %v833_v21 }
 0x515   :  { %v852_v31 = vcombine.low %v844_v29, %v851_v3  ;;  %v860_v32 = vrot.slane %v853_v30, %v1313_v5 }
 0x517   :  { %869 = vrot.lane.b32.xlu0 %v852_v31, %s1211_s28  ;;  %v868_v34 = vcombine.low %v860_v32, %v867_v33 }
 0x519   :  { %871 = vrot.lane.b32.xlu1 %v868_v34, %s1211_s28 }
 0x51d   :  { %891 = vrot.lane.b32.xlu1 %v888_v35, %s1210_s27 }
 0x585   :  { %v890_v36 = vpop.permute.xlu1 %889 }
 0x586   :  { %896 = vst.msk [vmem:[%s1469_s9 + $0x6] sm:$0x2] %vm895_vm12, %v890_v36 }
 0x589   :  { %v870_v37 = vpop.permute.xlu0 %869 }
 0x58a   :  { %876 = vst.msk [vmem:[%s1469_s9 + $0x1] sm:$0x3f] %vm875_vm13, %v870_v37 }
 0x58b   :  { %v872_v38 = vpop.permute.xlu1 %871 }
 0x58c   :  { %877 = vst.msk [vmem:[%s1469_s9 + $0x9] sm:$0x3f] %vm875_vm13, %v872_v38 }
 0x58f   :  { %v892_v5 = vpop.permute.xlu1 %891 }
 0x590   :  { %897 = vst.msk [vmem:[%s1469_s9 + $0xe] sm:$0x2] %vm895_vm12, %v892_v5 }
 0x591   :  { %902 = vsyncpa [#allocation3], 1 }
 0x592   :  { %903 = vsyncpa [#allocation5], 1 }
 0x593   :  { %904 = vsyncpa [#allocation8], 1 }

</bundles_post_ra>
